<compile_context>
chip_gen: v7x
topology: tpu7x:2x2x1
jax: 0.10.0
libtpu: 0.0.40
codegen_flags: <defaults>
</compile_context>

<pallas_src>
import functools

import jax
import jax.numpy as jnp
from jax.experimental import pallas as pl
from jax.experimental.pallas import tpu as pltpu


_TAPS = tuple((ky, kx) for ky in range(3) for kx in range(3))


def _build_patches(act, patches_ref, c, grid_w, grid_len):
    """Stack the 9 shifted (3x3 tap) copies of `act` (C, P) into patches_ref (9*C, P).

    Row block t = ky*3+kx of the patch matrix holds, in column p, the activation
    at flattened position p + (ky-1)*grid_w + (kx-1)  (pltpu.roll == jnp.roll,
    so rolled[p] = act[p - shift]; we use shift = -(offset) mod P).  Wrap-around
    values only ever land in border/garbage output positions that the wrapper
    slices away.
    """
    for t, (ky, kx) in enumerate(_TAPS):
        shift = ((1 - ky) * grid_w + (1 - kx)) % grid_len
        tap = act if shift == 0 else pltpu.roll(act, shift, axis=1)
        patches_ref[t * c:(t + 1) * c, :] = tap


def preact_block_kernel(x_ref, mask_ref, wl1_ref, wl2_ref, wsc_ref,
                        s1_ref, b1_ref, s2_ref, b2_ref,
                        out_ref, patches1_ref, patches2_ref,
                        *, grid_w, cin, cout, has_shortcut):
    grid_len = x_ref.shape[-1]                 # P (multiple of 128)
    mask = mask_ref[...]                       # (1, P) {0,1}: 1 on real pixels

    # --- BN1 (folded, inference mode) + ReLU; mask restores the zero padding ring
    x = x_ref[0]                               # (Cin, P) f32
    a = jnp.maximum(x * s1_ref[...] + b1_ref[...], 0.0) * mask

    # --- shortcut -----------------------------------------------------------
    if has_shortcut:
        sc = jnp.dot(wsc_ref[...], a.astype(jnp.bfloat16),
                     preferred_element_type=jnp.float32)          # (Cout, P)
    else:
        sc = x                                                    # Cin == Cout

    # --- conv1: one fused matmul over K = 9*Cin im2col rows ------------------
    _build_patches(a, patches1_ref, cin, grid_w, grid_len)
    c1 = jnp.dot(wl1_ref[...], patches1_ref[...].astype(jnp.bfloat16),
                 preferred_element_type=jnp.float32)              # (Cout, P)

    # --- BN2 + ReLU; mask = zero padding ring for conv2 ----------------------
    a2 = jnp.maximum(c1 * s2_ref[...] + b2_ref[...], 0.0) * mask

    # --- conv2: one fused matmul over K = 9*Cout ------------------------------
    _build_patches(a2, patches2_ref, cout, grid_w, grid_len)
    c2 = jnp.dot(wl2_ref[...], patches2_ref[...].astype(jnp.bfloat16),
                 preferred_element_type=jnp.float32)              # (Cout, P)

    # --- residual add; P is a multiple of 128 -> unmasked lane-dense stores ---
    out_ref[0] = (c2 + sc).astype(out_ref.dtype)


def preact_block_admm_nchw(x_nchw, params, stride=1, eps=1e-5):
    """x_nchw: (N, Cin, H, W) float32 -> (N, Cout, H, W) float32 (stride=1 path)."""
    if stride != 1:
        # TODO(synk): stride > 1 needs wrapper-side even/odd phase-plane decimation.
        raise NotImplementedError("fused Pallas PreActBlock kernel: stride > 1")

    N, Cin, H, W = x_nchw.shape
    w1 = params["w1"]                                   # (3, 3, Cin, Cout) HWIO
    w2 = params["w2"]                                   # (3, 3, Cout, Cout)
    Cout = w1.shape[-1]
    has_shortcut = (stride != 1) or (Cin != Cout)

    Hg, Wg = H + 2, W + 2                               # zero-padded grid
    Pg = Hg * Wg
    Pgp = ((Pg + 127) // 128) * 128                     # lane-aligned grid length

    # Fold BN (inference mode: running stats) into per-channel scale / bias.
    s1 = (params["bn1_gamma"] / jnp.sqrt(params["bn1_var"] + eps))
    b1 = params["bn1_beta"] - params["bn1_mean"] * s1
    s2 = (params["bn2_gamma"] / jnp.sqrt(params["bn2_var"] + eps))
    b2 = params["bn2_beta"] - params["bn2_mean"] * s2
    s1 = s1.reshape(Cin, 1).astype(jnp.float32)
    b1 = b1.reshape(Cin, 1).astype(jnp.float32)
    s2 = s2.reshape(Cout, 1).astype(jnp.float32)
    b2 = b2.reshape(Cout, 1).astype(jnp.float32)

    # Weights reshaped so one matmul consumes all 9 taps:  Wl[co, (ky,kx,ci)].
    wl1 = jnp.transpose(w1, (3, 0, 1, 2)).reshape(Cout, 9 * Cin).astype(jnp.bfloat16)
    wl2 = jnp.transpose(w2, (3, 0, 1, 2)).reshape(Cout, 9 * Cout).astype(jnp.bfloat16)
    wsc = params.get("wsc")
    if wsc is None:
        wsc = jnp.zeros((Cin, Cout), jnp.float32)
    wsct = jnp.transpose(wsc).astype(jnp.bfloat16)      # (Cout, Cin)

    # Pad once in the wrapper (XLA) and flatten spatial onto the lane axis.
    xp = jnp.pad(x_nchw.astype(jnp.float32), ((0, 0), (0, 0), (1, 1), (1, 1)))
    xg = jnp.zeros((N, Cin, Pgp), jnp.float32).at[:, :, :Pg].set(xp.reshape(N, Cin, Pg))
    m2d = jnp.pad(jnp.ones((H, W), jnp.float32), ((1, 1), (1, 1)))
    mask = jnp.zeros((1, Pgp), jnp.float32).at[0, :Pg].set(m2d.reshape(Pg))

    kernel = functools.partial(preact_block_kernel, grid_w=Wg, cin=Cin, cout=Cout,
                               has_shortcut=has_shortcut)

    flops = 2 * N * H * W * Cout * (9 * Cin + 9 * Cout)
    if has_shortcut:
        flops += 2 * N * H * W * Cout * Cin
    bytes_accessed = int(xg.size * 4 + N * Cout * Pgp * 4 + mask.size * 4
                         + wl1.size * 2 + wl2.size * 2 + wsct.size * 2
                         + (2 * Cin + 2 * Cout) * 4)

    out_flat = pl.pallas_call(
        kernel,
        out_shape=jax.ShapeDtypeStruct((N, Cout, Pgp), jnp.float32),
        grid=(N,),
        in_specs=[
            pl.BlockSpec((1, Cin, Pgp), lambda n: (n, 0, 0)),     # x (per image)
            pl.BlockSpec((1, Pgp), lambda n: (0, 0)),             # border mask
            pl.BlockSpec((Cout, 9 * Cin), lambda n: (0, 0)),      # conv1 weights
            pl.BlockSpec((Cout, 9 * Cout), lambda n: (0, 0)),     # conv2 weights
            pl.BlockSpec((Cout, Cin), lambda n: (0, 0)),          # shortcut weights
            pl.BlockSpec((Cin, 1), lambda n: (0, 0)),             # bn1 scale
            pl.BlockSpec((Cin, 1), lambda n: (0, 0)),             # bn1 bias
            pl.BlockSpec((Cout, 1), lambda n: (0, 0)),            # bn2 scale
            pl.BlockSpec((Cout, 1), lambda n: (0, 0)),            # bn2 bias
        ],
        out_specs=pl.BlockSpec((1, Cout, Pgp), lambda n: (n, 0, 0)),
        scratch_shapes=[
            pltpu.VMEM((9 * Cin, Pgp), jnp.float32),              # conv1 im2col patches
            pltpu.VMEM((9 * Cout, Pgp), jnp.float32),             # conv2 im2col patches
        ],
        compiler_params=pltpu.CompilerParams(dimension_semantics=("parallel",)),
        cost_estimate=pl.CostEstimate(flops=flops, transcendentals=0,
                                      bytes_accessed=bytes_accessed),
    )(xg, mask, wl1, wl2, wsct, s1, b1, s2, b2)

    # Free reshape back to NCHW and drop the padding ring / lane padding.
    out = out_flat[:, :, :Pg].reshape(N, Cout, Hg, Wg)[:, :, 1:H + 1, 1:W + 1]
    return out


# ----------------------------- pure-JAX reference -----------------------------
def _fold_bn(gamma, beta, mean, var, eps):
    s = gamma / jnp.sqrt(var + eps)
    return s, beta - mean * s


def reference_nchw(x, params, stride=1, eps=1e-5):
    """Same math as the kernel (bf16 conv operands, f32 accumulation / elementwise)."""
    N, Cin, H, W = x.shape
    w1, w2 = params["w1"], params["w2"]
    Cout = w1.shape[-1]
    has_shortcut = (stride != 1) or (Cin != Cout)
    dn = ("NCHW", "HWIO", "NCHW")

    def conv(inp, w, s, pad):
        return jax.lax.conv_general_dilated(
            inp.astype(jnp.bfloat16), w.astype(jnp.bfloat16), (s, s), pad,
            dimension_numbers=dn, preferred_element_type=jnp.float32)

    s1, b1 = _fold_bn(params["bn1_gamma"], params["bn1_beta"],
                      params["bn1_mean"], params["bn1_var"], eps)
    s2, b2 = _fold_bn(params["bn2_gamma"], params["bn2_beta"],
                      params["bn2_mean"], params["bn2_var"], eps)

    a = jax.nn.relu(x * s1.reshape(1, -1, 1, 1) + b1.reshape(1, -1, 1, 1))
    if has_shortcut:
        shortcut = conv(a, params["wsc"].reshape(1, 1, Cin, Cout), stride,
                        ((0, 0), (0, 0)))
    else:
        shortcut = x
    c1 = conv(a, w1, stride, ((1, 1), (1, 1)))
    a2 = jax.nn.relu(c1 * s2.reshape(1, -1, 1, 1) + b2.reshape(1, -1, 1, 1))
    c2 = conv(a2, w2, 1, ((1, 1), (1, 1)))
    return c2 + shortcut


def _make_params(key, cin, cout, with_shortcut):
    ks = jax.random.split(key, 12)
    p = {
        "w1": 0.1 * jax.random.normal(ks[0], (3, 3, cin, cout), jnp.float32),
        "w2": 0.1 * jax.random.normal(ks[1], (3, 3, cout, cout), jnp.float32),
        "bn1_gamma": 1.0 + 0.1 * jax.random.normal(ks[2], (cin,), jnp.float32),
        "bn1_beta": 0.1 * jax.random.normal(ks[3], (cin,), jnp.float32),
        "bn1_mean": 0.1 * jax.random.normal(ks[4], (cin,), jnp.float32),
        "bn1_var": jax.random.uniform(ks[5], (cin,), jnp.float32, 0.5, 1.5),
        "bn2_gamma": 1.0 + 0.1 * jax.random.normal(ks[6], (cout,), jnp.float32),
        "bn2_beta": 0.1 * jax.random.normal(ks[7], (cout,), jnp.float32),
        "bn2_mean": 0.1 * jax.random.normal(ks[8], (cout,), jnp.float32),
        "bn2_var": jax.random.uniform(ks[9], (cout,), jnp.float32, 0.5, 1.5),
    }
    if with_shortcut:
        p["wsc"] = 0.1 * jax.random.normal(ks[10], (cin, cout), jnp.float32)
    return p


if __name__ == "__main__":
    key = jax.random.PRNGKey(0)
    N, H, W = 2, 16, 16
    tol = 5e-3

    # Config 1: in_planes != planes  -> 1x1 projection shortcut (like the module).
    k1, k2, k3, k4 = jax.random.split(key, 4)
    x1 = jax.random.normal(k1, (N, 4, H, W), jnp.float32)
    p1 = _make_params(k2, 4, 8, with_shortcut=True)
    out1 = jax.block_until_ready(preact_block_admm_nchw(x1, p1, stride=1))
    ref1 = reference_nchw(x1, p1, stride=1)
    err1 = float(jnp.max(jnp.abs(out1 - ref1)))
    assert out1.shape == ref1.shape, (out1.shape, ref1.shape)
    assert err1 < tol, f"shortcut config: max abs err = {err1}"

    # Config 2: in_planes == planes, stride 1 -> identity shortcut.
    x2 = jax.random.normal(k3, (N, 8, H, W), jnp.float32)
    p2 = _make_params(k4, 8, 8, with_shortcut=False)
    out2 = jax.block_until_ready(preact_block_admm_nchw(x2, p2, stride=1))
    ref2 = reference_nchw(x2, p2, stride=1)
    err2 = float(jnp.max(jnp.abs(out2 - ref2)))
    assert out2.shape == ref2.shape, (out2.shape, ref2.shape)
    assert err2 < tol, f"identity config: max abs err = {err2}"

    print("KERNEL_OK")
</pallas_src>

<mosaic_0001>
module attributes {stable_mosaic.version = 11 : i64} {
  func.func @preact_block_kernel(%arg0: i32, %arg1: memref<1x4x384xf32, #tpu.memory_space<vmem>>, %arg2: memref<1x384xf32, #tpu.memory_space<vmem>>, %arg3: memref<8x36xbf16, #tpu.memory_space<vmem>>, %arg4: memref<8x72xbf16, #tpu.memory_space<vmem>>, %arg5: memref<8x4xbf16, #tpu.memory_space<vmem>>, %arg6: memref<4x1xf32, #tpu.memory_space<vmem>>, %arg7: memref<4x1xf32, #tpu.memory_space<vmem>>, %arg8: memref<8x1xf32, #tpu.memory_space<vmem>>, %arg9: memref<8x1xf32, #tpu.memory_space<vmem>>, %arg10: memref<1x8x384xf32, #tpu.memory_space<vmem>>, %arg11: memref<36x384xf32, #tpu.memory_space<vmem>>, %arg12: memref<72x384xf32, #tpu.memory_space<vmem>>) attributes {dimension_semantics = [#tpu.dimension_semantics<parallel>], iteration_bounds = array<i64: 2>, scalar_prefetch = 0 : i64, scratch_operands = 2 : i64, tpu.core_type = #tpu.core_type<tc>, window_params = [{transform_indices = @transform_0, window_bounds = array<i64: 1, 4, 384>}, {pipeline_mode = #tpu.pipeline_mode<synchronous>, transform_indices = @transform_1, window_bounds = array<i64: 1, 384>}, {pipeline_mode = #tpu.pipeline_mode<synchronous>, transform_indices = @transform_2, window_bounds = array<i64: 8, 36>}, {pipeline_mode = #tpu.pipeline_mode<synchronous>, transform_indices = @transform_3, window_bounds = array<i64: 8, 72>}, {pipeline_mode = #tpu.pipeline_mode<synchronous>, transform_indices = @transform_4, window_bounds = array<i64: 8, 4>}, {pipeline_mode = #tpu.pipeline_mode<synchronous>, transform_indices = @transform_5, window_bounds = array<i64: 4, 1>}, {pipeline_mode = #tpu.pipeline_mode<synchronous>, transform_indices = @transform_6, window_bounds = array<i64: 4, 1>}, {pipeline_mode = #tpu.pipeline_mode<synchronous>, transform_indices = @transform_7, window_bounds = array<i64: 8, 1>}, {pipeline_mode = #tpu.pipeline_mode<synchronous>, transform_indices = @transform_8, window_bounds = array<i64: 8, 1>}, {transform_indices = @transform_9, window_bounds = array<i64: 1, 8, 384>}]} {
    %c0 = arith.constant 0 : index
    %c0_0 = arith.constant 0 : index
    %0 = vector.load %arg2[%c0, %c0_0] : memref<1x384xf32, #tpu.memory_space<vmem>>, vector<1x384xf32>
    %c0_1 = arith.constant 0 : index
    %c0_2 = arith.constant 0 : index
    %c0_3 = arith.constant 0 : index
    %1 = vector.load %arg1[%c0_1, %c0_2, %c0_3] : memref<1x4x384xf32, #tpu.memory_space<vmem>>, vector<1x4x384xf32>
    %2 = vector.shape_cast %1 : vector<1x4x384xf32> to vector<4x384xf32>
    %c0_4 = arith.constant 0 : index
    %c0_5 = arith.constant 0 : index
    %3 = vector.load %arg6[%c0_4, %c0_5] : memref<4x1xf32, #tpu.memory_space<vmem>>, vector<4x1xf32>
    %4 = vector.broadcast %3 : vector<4x1xf32> to vector<4x384xf32>
    %5 = arith.mulf %2, %4 : vector<4x384xf32>
    %c0_6 = arith.constant 0 : index
    %c0_7 = arith.constant 0 : index
    %6 = vector.load %arg7[%c0_6, %c0_7] : memref<4x1xf32, #tpu.memory_space<vmem>>, vector<4x1xf32>
    %7 = vector.broadcast %6 : vector<4x1xf32> to vector<4x384xf32>
    %8 = arith.addf %5, %7 : vector<4x384xf32>
    %cst = arith.constant 0.000000e+00 : f32
    %9 = vector.broadcast %cst : f32 to vector<4x384xf32>
    %10 = arith.maximumf %8, %9 : vector<4x384xf32>
    %11 = vector.broadcast %0 : vector<1x384xf32> to vector<4x384xf32>
    %12 = arith.mulf %10, %11 : vector<4x384xf32>
    %c0_8 = arith.constant 0 : index
    %c0_9 = arith.constant 0 : index
    %13 = vector.load %arg5[%c0_8, %c0_9] : memref<8x4xbf16, #tpu.memory_space<vmem>>, vector<8x4xbf16>
    %14 = arith.truncf %12 : vector<4x384xf32> to vector<4x384xbf16>
    %cst_10 = arith.constant dense<0.000000e+00> : vector<8x384xf32>
    %15 = tpu.matmul %13, %14, %cst_10 {dimension_numbers = #tpu.dot_dimension_numbers<[1], [0], [0], [1], [0, 0, 1, 1], [], []>} : vector<8x4xbf16>, vector<4x384xbf16>, vector<8x384xf32> -> vector<8x384xf32>
    %c19_i32 = arith.constant 19 : i32
    %16 = tpu.dynamic_rotate %12 by %c19_i32 dim 1 : vector<4x384xf32>, i32 -> vector<4x384xf32>
    %c0_11 = arith.constant 0 : index
    %c0_12 = arith.constant 0 : index
    %17 = vector.load %arg11[%c0_11, %c0_12] : memref<36x384xf32, #tpu.memory_space<vmem>>, vector<4x384xf32>
    tpu.vector_store %arg11[%c0_11, %c0_12], %16 {strides = array<i32>} : memref<36x384xf32, #tpu.memory_space<vmem>>, vector<4x384xf32>,
    %c18_i32 = arith.constant 18 : i32
    %18 = tpu.dynamic_rotate %12 by %c18_i32 dim 1 : vector<4x384xf32>, i32 -> vector<4x384xf32>
    %c4 = arith.constant 4 : index
    %c0_13 = arith.constant 0 : index
    %19 = vector.load %arg11[%c4, %c0_13] : memref<36x384xf32, #tpu.memory_space<vmem>>, vector<4x384xf32>
    tpu.vector_store %arg11[%c4, %c0_13], %18 {strides = array<i32>} : memref<36x384xf32, #tpu.memory_space<vmem>>, vector<4x384xf32>,
    %c17_i32 = arith.constant 17 : i32
    %20 = tpu.dynamic_rotate %12 by %c17_i32 dim 1 : vector<4x384xf32>, i32 -> vector<4x384xf32>
    %c8 = arith.constant 8 : index
    %c0_14 = arith.constant 0 : index
    %21 = vector.load %arg11[%c8, %c0_14] : memref<36x384xf32, #tpu.memory_space<vmem>>, vector<4x384xf32>
    tpu.vector_store %arg11[%c8, %c0_14], %20 {strides = array<i32>} : memref<36x384xf32, #tpu.memory_space<vmem>>, vector<4x384xf32>,
    %c1_i32 = arith.constant 1 : i32
    %22 = tpu.dynamic_rotate %12 by %c1_i32 dim 1 : vector<4x384xf32>, i32 -> vector<4x384xf32>
    %c12 = arith.constant 12 : index
    %c0_15 = arith.constant 0 : index
    %23 = vector.load %arg11[%c12, %c0_15] : memref<36x384xf32, #tpu.memory_space<vmem>>, vector<4x384xf32>
    tpu.vector_store %arg11[%c12, %c0_15], %22 {strides = array<i32>} : memref<36x384xf32, #tpu.memory_space<vmem>>, vector<4x384xf32>,
    %c16 = arith.constant 16 : index
    %c0_16 = arith.constant 0 : index
    %24 = vector.load %arg11[%c16, %c0_16] : memref<36x384xf32, #tpu.memory_space<vmem>>, vector<4x384xf32>
    tpu.vector_store %arg11[%c16, %c0_16], %12 {strides = array<i32>} : memref<36x384xf32, #tpu.memory_space<vmem>>, vector<4x384xf32>,
    %c383_i32 = arith.constant 383 : i32
    %25 = tpu.dynamic_rotate %12 by %c383_i32 dim 1 : vector<4x384xf32>, i32 -> vector<4x384xf32>
    %c20 = arith.constant 20 : index
    %c0_17 = arith.constant 0 : index
    %26 = vector.load %arg11[%c20, %c0_17] : memref<36x384xf32, #tpu.memory_space<vmem>>, vector<4x384xf32>
    tpu.vector_store %arg11[%c20, %c0_17], %25 {strides = array<i32>} : memref<36x384xf32, #tpu.memory_space<vmem>>, vector<4x384xf32>,
    %c367_i32 = arith.constant 367 : i32
    %27 = tpu.dynamic_rotate %12 by %c367_i32 dim 1 : vector<4x384xf32>, i32 -> vector<4x384xf32>
    %c24 = arith.constant 24 : index
    %c0_18 = arith.constant 0 : index
    %28 = vector.load %arg11[%c24, %c0_18] : memref<36x384xf32, #tpu.memory_space<vmem>>, vector<4x384xf32>
    tpu.vector_store %arg11[%c24, %c0_18], %27 {strides = array<i32>} : memref<36x384xf32, #tpu.memory_space<vmem>>, vector<4x384xf32>,
    %c366_i32 = arith.constant 366 : i32
    %29 = tpu.dynamic_rotate %12 by %c366_i32 dim 1 : vector<4x384xf32>, i32 -> vector<4x384xf32>
    %c28 = arith.constant 28 : index
    %c0_19 = arith.constant 0 : index
    %30 = vector.load %arg11[%c28, %c0_19] : memref<36x384xf32, #tpu.memory_space<vmem>>, vector<4x384xf32>
    tpu.vector_store %arg11[%c28, %c0_19], %29 {strides = array<i32>} : memref<36x384xf32, #tpu.memory_space<vmem>>, vector<4x384xf32>,
    %c365_i32 = arith.constant 365 : i32
    %31 = tpu.dynamic_rotate %12 by %c365_i32 dim 1 : vector<4x384xf32>, i32 -> vector<4x384xf32>
    %c32 = arith.constant 32 : index
    %c0_20 = arith.constant 0 : index
    %32 = vector.load %arg11[%c32, %c0_20] : memref<36x384xf32, #tpu.memory_space<vmem>>, vector<4x384xf32>
    tpu.vector_store %arg11[%c32, %c0_20], %31 {strides = array<i32>} : memref<36x384xf32, #tpu.memory_space<vmem>>, vector<4x384xf32>,
    %c0_21 = arith.constant 0 : index
    %c0_22 = arith.constant 0 : index
    %33 = vector.load %arg3[%c0_21, %c0_22] : memref<8x36xbf16, #tpu.memory_space<vmem>>, vector<8x36xbf16>
    %c0_23 = arith.constant 0 : index
    %c0_24 = arith.constant 0 : index
    %34 = vector.load %arg11[%c0_23, %c0_24] : memref<36x384xf32, #tpu.memory_space<vmem>>, vector<36x384xf32>
    %35 = arith.truncf %34 : vector<36x384xf32> to vector<36x384xbf16>
    %cst_25 = arith.constant dense<0.000000e+00> : vector<8x384xf32>
    %36 = tpu.matmul %33, %35, %cst_25 {dimension_numbers = #tpu.dot_dimension_numbers<[1], [0], [0], [1], [0, 0, 1, 1], [], []>} : vector<8x36xbf16>, vector<36x384xbf16>, vector<8x384xf32> -> vector<8x384xf32>
    %c0_26 = arith.constant 0 : index
    %c0_27 = arith.constant 0 : index
    %37 = vector.load %arg8[%c0_26, %c0_27] : memref<8x1xf32, #tpu.memory_space<vmem>>, vector<8x1xf32>
    %38 = vector.broadcast %37 : vector<8x1xf32> to vector<8x384xf32>
    %39 = arith.mulf %36, %38 : vector<8x384xf32>
    %c0_28 = arith.constant 0 : index
    %c0_29 = arith.constant 0 : index
    %40 = vector.load %arg9[%c0_28, %c0_29] : memref<8x1xf32, #tpu.memory_space<vmem>>, vector<8x1xf32>
    %41 = vector.broadcast %40 : vector<8x1xf32> to vector<8x384xf32>
    %42 = arith.addf %39, %41 : vector<8x384xf32>
    %cst_30 = arith.constant 0.000000e+00 : f32
    %43 = vector.broadcast %cst_30 : f32 to vector<8x384xf32>
    %44 = arith.maximumf %42, %43 : vector<8x384xf32>
    %45 = vector.broadcast %0 : vector<1x384xf32> to vector<8x384xf32>
    %46 = arith.mulf %44, %45 : vector<8x384xf32>
    %c19_i32_31 = arith.constant 19 : i32
    %47 = tpu.dynamic_rotate %46 by %c19_i32_31 dim 1 : vector<8x384xf32>, i32 -> vector<8x384xf32>
    %c0_32 = arith.constant 0 : index
    %c0_33 = arith.constant 0 : index
    %48 = vector.load %arg12[%c0_32, %c0_33] : memref<72x384xf32, #tpu.memory_space<vmem>>, vector<8x384xf32>
    tpu.vector_store %arg12[%c0_32, %c0_33], %47 {strides = array<i32>} : memref<72x384xf32, #tpu.memory_space<vmem>>, vector<8x384xf32>,
    %c18_i32_34 = arith.constant 18 : i32
    %49 = tpu.dynamic_rotate %46 by %c18_i32_34 dim 1 : vector<8x384xf32>, i32 -> vector<8x384xf32>
    %c8_35 = arith.constant 8 : index
    %c0_36 = arith.constant 0 : index
    %50 = vector.load %arg12[%c8_35, %c0_36] : memref<72x384xf32, #tpu.memory_space<vmem>>, vector<8x384xf32>
    tpu.vector_store %arg12[%c8_35, %c0_36], %49 {strides = array<i32>} : memref<72x384xf32, #tpu.memory_space<vmem>>, vector<8x384xf32>,
    %c17_i32_37 = arith.constant 17 : i32
    %51 = tpu.dynamic_rotate %46 by %c17_i32_37 dim 1 : vector<8x384xf32>, i32 -> vector<8x384xf32>
    %c16_38 = arith.constant 16 : index
    %c0_39 = arith.constant 0 : index
    %52 = vector.load %arg12[%c16_38, %c0_39] : memref<72x384xf32, #tpu.memory_space<vmem>>, vector<8x384xf32>
    tpu.vector_store %arg12[%c16_38, %c0_39], %51 {strides = array<i32>} : memref<72x384xf32, #tpu.memory_space<vmem>>, vector<8x384xf32>,
    %c1_i32_40 = arith.constant 1 : i32
    %53 = tpu.dynamic_rotate %46 by %c1_i32_40 dim 1 : vector<8x384xf32>, i32 -> vector<8x384xf32>
    %c24_41 = arith.constant 24 : index
    %c0_42 = arith.constant 0 : index
    %54 = vector.load %arg12[%c24_41, %c0_42] : memref<72x384xf32, #tpu.memory_space<vmem>>, vector<8x384xf32>
    tpu.vector_store %arg12[%c24_41, %c0_42], %53 {strides = array<i32>} : memref<72x384xf32, #tpu.memory_space<vmem>>, vector<8x384xf32>,
    %c32_43 = arith.constant 32 : index
    %c0_44 = arith.constant 0 : index
    %55 = vector.load %arg12[%c32_43, %c0_44] : memref<72x384xf32, #tpu.memory_space<vmem>>, vector<8x384xf32>
    tpu.vector_store %arg12[%c32_43, %c0_44], %46 {strides = array<i32>} : memref<72x384xf32, #tpu.memory_space<vmem>>, vector<8x384xf32>,
    %c383_i32_45 = arith.constant 383 : i32
    %56 = tpu.dynamic_rotate %46 by %c383_i32_45 dim 1 : vector<8x384xf32>, i32 -> vector<8x384xf32>
    %c40 = arith.constant 40 : index
    %c0_46 = arith.constant 0 : index
    %57 = vector.load %arg12[%c40, %c0_46] : memref<72x384xf32, #tpu.memory_space<vmem>>, vector<8x384xf32>
    tpu.vector_store %arg12[%c40, %c0_46], %56 {strides = array<i32>} : memref<72x384xf32, #tpu.memory_space<vmem>>, vector<8x384xf32>,
    %c367_i32_47 = arith.constant 367 : i32
    %58 = tpu.dynamic_rotate %46 by %c367_i32_47 dim 1 : vector<8x384xf32>, i32 -> vector<8x384xf32>
    %c48 = arith.constant 48 : index
    %c0_48 = arith.constant 0 : index
    %59 = vector.load %arg12[%c48, %c0_48] : memref<72x384xf32, #tpu.memory_space<vmem>>, vector<8x384xf32>
    tpu.vector_store %arg12[%c48, %c0_48], %58 {strides = array<i32>} : memref<72x384xf32, #tpu.memory_space<vmem>>, vector<8x384xf32>,
    %c366_i32_49 = arith.constant 366 : i32
    %60 = tpu.dynamic_rotate %46 by %c366_i32_49 dim 1 : vector<8x384xf32>, i32 -> vector<8x384xf32>
    %c56 = arith.constant 56 : index
    %c0_50 = arith.constant 0 : index
    %61 = vector.load %arg12[%c56, %c0_50] : memref<72x384xf32, #tpu.memory_space<vmem>>, vector<8x384xf32>
    tpu.vector_store %arg12[%c56, %c0_50], %60 {strides = array<i32>} : memref<72x384xf32, #tpu.memory_space<vmem>>, vector<8x384xf32>,
    %c365_i32_51 = arith.constant 365 : i32
    %62 = tpu.dynamic_rotate %46 by %c365_i32_51 dim 1 : vector<8x384xf32>, i32 -> vector<8x384xf32>
    %c64 = arith.constant 64 : index
    %c0_52 = arith.constant 0 : index
    %63 = vector.load %arg12[%c64, %c0_52] : memref<72x384xf32, #tpu.memory_space<vmem>>, vector<8x384xf32>
    tpu.vector_store %arg12[%c64, %c0_52], %62 {strides = array<i32>} : memref<72x384xf32, #tpu.memory_space<vmem>>, vector<8x384xf32>,
    %c0_53 = arith.constant 0 : index
    %c0_54 = arith.constant 0 : index
    %64 = vector.load %arg4[%c0_53, %c0_54] : memref<8x72xbf16, #tpu.memory_space<vmem>>, vector<8x72xbf16>
    %c0_55 = arith.constant 0 : index
    %c0_56 = arith.constant 0 : index
    %65 = vector.load %arg12[%c0_55, %c0_56] : memref<72x384xf32, #tpu.memory_space<vmem>>, vector<72x384xf32>
    %66 = arith.truncf %65 : vector<72x384xf32> to vector<72x384xbf16>
    %cst_57 = arith.constant dense<0.000000e+00> : vector<8x384xf32>
    %67 = tpu.matmul %64, %66, %cst_57 {dimension_numbers = #tpu.dot_dimension_numbers<[1], [0], [0], [1], [0, 0, 1, 1], [], []>} : vector<8x72xbf16>, vector<72x384xbf16>, vector<8x384xf32> -> vector<8x384xf32>
    %68 = arith.addf %67, %15 : vector<8x384xf32>
    %c0_58 = arith.constant 0 : index
    %c0_59 = arith.constant 0 : index
    %c0_60 = arith.constant 0 : index
    %69 = vector.load %arg10[%c0_58, %c0_59, %c0_60] : memref<1x8x384xf32, #tpu.memory_space<vmem>>, vector<1x8x384xf32>
    %70 = vector.shape_cast %69 : vector<1x8x384xf32> to vector<8x384xf32>
    %71 = vector.shape_cast %68 : vector<8x384xf32> to vector<1x8x384xf32>
    tpu.vector_store %arg10[%c0_58, %c0_59, %c0_60], %71 {strides = array<i32>} : memref<1x8x384xf32, #tpu.memory_space<vmem>>, vector<1x8x384xf32>,
    return
  }
  func.func @transform_0(%arg0: i32) -> (i32, i32, i32) {
    %c0_i32 = arith.constant 0 : i32
    %c0_i32_0 = arith.constant 0 : i32
    %c0_i32_1 = arith.constant 0 : i32
    return %arg0, %c0_i32, %c0_i32_0 : i32, i32, i32
  }
  func.func @transform_1(%arg0: i32) -> (i32, i32) {
    %c0_i32 = arith.constant 0 : i32
    %c0_i32_0 = arith.constant 0 : i32
    %c0_i32_1 = arith.constant 0 : i32
    return %c0_i32, %c0_i32_0 : i32, i32
  }
  func.func @transform_2(%arg0: i32) -> (i32, i32) {
    %c0_i32 = arith.constant 0 : i32
    %c0_i32_0 = arith.constant 0 : i32
    %c0_i32_1 = arith.constant 0 : i32
    return %c0_i32, %c0_i32_0 : i32, i32
  }
  func.func @transform_3(%arg0: i32) -> (i32, i32) {
    %c0_i32 = arith.constant 0 : i32
    %c0_i32_0 = arith.constant 0 : i32
    %c0_i32_1 = arith.constant 0 : i32
    return %c0_i32, %c0_i32_0 : i32, i32
  }
  func.func @transform_4(%arg0: i32) -> (i32, i32) {
    %c0_i32 = arith.constant 0 : i32
    %c0_i32_0 = arith.constant 0 : i32
    %c0_i32_1 = arith.constant 0 : i32
    return %c0_i32, %c0_i32_0 : i32, i32
  }
  func.func @transform_5(%arg0: i32) -> (i32, i32) {
    %c0_i32 = arith.constant 0 : i32
    %c0_i32_0 = arith.constant 0 : i32
    %c0_i32_1 = arith.constant 0 : i32
    return %c0_i32, %c0_i32_0 : i32, i32
  }
  func.func @transform_6(%arg0: i32) -> (i32, i32) {
    %c0_i32 = arith.constant 0 : i32
    %c0_i32_0 = arith.constant 0 : i32
    %c0_i32_1 = arith.constant 0 : i32
    return %c0_i32, %c0_i32_0 : i32, i32
  }
  func.func @transform_7(%arg0: i32) -> (i32, i32) {
    %c0_i32 = arith.constant 0 : i32
    %c0_i32_0 = arith.constant 0 : i32
    %c0_i32_1 = arith.constant 0 : i32
    return %c0_i32, %c0_i32_0 : i32, i32
  }
  func.func @transform_8(%arg0: i32) -> (i32, i32) {
    %c0_i32 = arith.constant 0 : i32
    %c0_i32_0 = arith.constant 0 : i32
    %c0_i32_1 = arith.constant 0 : i32
    return %c0_i32, %c0_i32_0 : i32, i32
  }
  func.func @transform_9(%arg0: i32) -> (i32, i32, i32) {
    %c0_i32 = arith.constant 0 : i32
    %c0_i32_0 = arith.constant 0 : i32
    %c0_i32_1 = arith.constant 0 : i32
    return %arg0, %c0_i32, %c0_i32_0 : i32, i32, i32
  }
}

</mosaic_0001>

<bundles_post_ra>
// kernel: tpu_custom_call.1
= control target key start
LH: loop header
LB: loop body
LE: loop exit
PB: predicated region body
PF: predicated region fallthrough
CT: control target
= control target key end

     0   :  { %14 = vsyncpa [#allocation5], 0  ;;  %s1720_s0 = inlined_call_operand.vmem [shape: f32[2,4,384], index: 0, kind: input, shape index: {}]   ;;  %s1721_s1 = inlined_call_operand.vmem [shape: f32[1,384], index: 1, kind: input, shape index: {}]   ;;  %s1722_s2 = inlined_call_operand.vmem [shape: bf16[8,36], index: 2, kind: input, shape index: {}]   ;;  %s1723_s3 = inlined_call_operand.vmem [shape: bf16[8,72], index: 3, kind: input, shape index: {}]   ;;  %s1724_s4 = inlined_call_operand.vmem [shape: bf16[8,4], index: 4, kind: input, shape index: {}]   ;;  %s1725_s5 = inlined_call_operand.vmem [shape: f32[4,1], index: 5, kind: input, shape index: {}]   ;;  %s1726_s6 = inlined_call_operand.vmem [shape: f32[4,1], index: 6, kind: input, shape index: {}]   ;;  %s1727_s7 = inlined_call_operand.vmem [shape: f32[8,1], index: 7, kind: input, shape index: {}]   ;;  %s1728_s8 = inlined_call_operand.vmem [shape: f32[8,1], index: 8, kind: input, shape index: {}]   ;;  %s1729_s9 = inlined_call_operand.hbm [shape: f32[2,8,384], index: 9, kind: output, shape index: {}]  }
   0x1   :  { %16 = vsyncpa [#allocation5 + $0x1], 0  ;;  %s1381_s30 = smov 0   ;;  %s1383_s10 = smov 0  }
   0x2   :  { %s1385_s11 = smov 0   ;;  %s1387_s12 = smov 0  }
   0x3 LB: > { %s1402_s13 = sadd.s32 4294967295, %s1316_s12   ;;  %s1091_s14 = sadd.s32 4294967294, %s1316_s12   ;;  %s1316_s12 = sphi %s1387_s12, %s1735_s12   ;;  %s1312_s11 = sphi %s1385_s11, %s1734_s11   ;;  %s1308_s10 = sphi %s1383_s10, %s1733_s10   ;;  %s1304_s30 = sphi %s1381_s30, %s1732_s30  }
   0x4   : > { %s1406_s15 = sadd.s32 1, %s1316_s12   ;;  %s223_s16 = sadd.s32 1, %s1312_s11 }
   0x5   : > { %s220_s17 = ssub.s32 %s1316_s12, %s1406_s15  ;;  %p233_p0 = scmp.ne.s32.totalorder %s1312_s11, %s1308_s10 }
   0x6   : > { %p221_p1 = scmp.eq.s32.totalorder %s220_s17, 0  ;;  %p234_p2 = scmp.eq.s32.totalorder %s1402_s13, 1 }
   0x7   : > { %p239_p3 = scmp.ne.s32.totalorder %s1308_s10, %s1304_s30  ;;  %p240_p4 = scmp.eq.s32.totalorder %s1091_s14, 1 }
   0x8   : > { %s1417_s18 = scalar_select %p221_p1, %s1312_s11, %s223_s16  }
   0x9   : > { %p1419_p5 = por %p234_p2, %p233_p0  ;;  %p1423_p6 = por %p240_p4, %p239_p3 }
   0xa   : > { %p1094_p7 = scmp.ge.s32.totalorder %s1316_s12, 1  ;;  %p290_p8 = scmp.lt.s32.totalorder %s1316_s12, 3 }
   0xc   : > { %p291_p9 = pnand %p1094_p7, %p290_p8 }
   0xd   : > { %v335_v0 = vld [vmem:[%s1725_s5] sm:$0xf] (!%p291_p9)  ;;  %v1318_v1 = vmov (!%p291_p9), 0   ;;  %v1319_v3 = vmov (!%p291_p9), 0.0   ;;  %p326_p10 = scmp.lt.s32.totalorder (!%p291_p9), %s1402_s13, 1  ;;  %v343_v6 = vlaneseq (!%p291_p9)  ;;  %vm396_vm0 = vcmask (!%p291_p9), 1041408  }
   0xe   : > { %294 = sbr.rel (%p291_p9) target bundleno = 935 (0x3a7), region = 56  ;;  %1212 = vset.pattern.permute.xlu0 (!%p291_p9), %v1318_v1  ;;  %438 = vmatprep.mubr.bf16.mxu0 (!%p291_p9), %v1318_v1  ;;  %v350_v2 = vld [vmem:[%s1726_s6] sm:$0xf] (!%p291_p9)  ;;  %v1320_v4 = vmov (!%p291_p9), 839922192   ;;  %s1321_s17 = smov (!%p291_p9), 1  }
   0xf   : > { %338 = vperm.xlu0 (!%p291_p9), %1212, %v335_v0   ;;  %1213 = vset.pattern.permute.xlu1 (!%p291_p9), %v1318_v1  ;;  %v341_v5 = vunpack.c.l.s4 (!%p291_p9), %v1320_v4  ;;  %v344_v8 = vshrl.u32 (!%p291_p9), %v343_v6, 7  ;;  %v332_v13 = vld [vmem:[%s1721_s1] sm:$0x7] (!%p291_p9)  ;;  %s1322_s21 = smov (!%p291_p9), 18   ;;  %s1323_s22 = smov (!%p291_p9), 19   ;;  %vm392_vm1 = vcmask (!%p291_p9), 31744  }
  0x10   : > { %1120 = vmatprep.subr.bf16.mxu1 (!%p291_p9), %v1319_v3  ;;  %s1324_s23 = smov (!%p291_p9), 17   ;;  %s1325_s24 = smov (!%p291_p9), 127   ;;  %v385_v38 = vld [vmem:[%s1724_s4] sm:$0xf] (!%p291_p9)  ;;  %vm1328_vm2 = vmmov (!%p291_p9), 0   ;;  %v1500_v41 = vand.u32 (!%p291_p9), 127, %v343_v6 }
  0x11   : > { %v342_v7 = vunpack.c.0.s8 (!%p291_p9), %v341_v5  ;;  %v370_v10 = vsub.s32 (!%p291_p9), 0, %v344_v8  ;;  %v374_v11 = vsub.s32 (!%p291_p9), 1, %v344_v8  ;;  %v378_v17 = vsub.s32 (!%p291_p9), 2, %v344_v8  ;;  %1122 = vmatprep.mubr.msk.bf16.mxu1 (!%p291_p9), %vm1328_vm2, %v1319_v3  ;;  %v751_v39 = vld [vmem:[%s1727_s7] sm:$0xff] (!%p291_p9)  ;;  %s1330_s16 = smov (!%p291_p9), [#allocation4]  }
  0x12   : > { %v760_v40 = vld [vmem:[%s1728_s8] sm:$0xff] (!%p291_p9)  ;;  %vm508_vm3 = vcmp.lt.s32.totalorder (!%p291_p9), %v1500_v41, 18  ;;  %vm543_vm4 = vcmp.lt.s32.totalorder (!%p291_p9), %v1500_v41, 1  ;;  %vm530_vm5 = vcmp.lt.s32.totalorder (!%p291_p9), %v1500_v41, 17  ;;  %vm495_vm6 = vcmp.lt.s32.totalorder (!%p291_p9), %v1500_v41, 19 }
  0x13   : > { %353 = vperm.xlu0 (!%p291_p9), %1212, %v350_v2   ;;  %v345_v9 = vsub.s32 (!%p291_p9), %v342_v7, %v344_v8  ;;  %v1448_v18 = vrot.slane (!%p291_p9), %v332_v13, %v370_v10  ;;  %v1450_v19 = vrot.slane (!%p291_p9), %v332_v13, %v374_v11  ;;  %v1452_v26 = vrot.slane (!%p291_p9), %v332_v13, %v378_v17 }
  0x14   : > { %vm568_vm7 = vcmp.lt.s32.totalorder (!%p291_p9), %v1500_v41, 127  ;;  %vm603_vm8 = vcmp.lt.s32.totalorder (!%p291_p9), %v1500_v41, 110  ;;  %vm590_vm9 = vcmp.lt.s32.totalorder (!%p291_p9), %v1500_v41, 111  ;;  %vm625_vm10 = vcmp.lt.s32.totalorder (!%p291_p9), %v1500_v41, 109 }
  0x15   : > { %s327_s25 = scalar_select %p326_p10, %s1402_s13, 1  ;;  %v381_v27 = vcombine.low %v1448_v18, %v1450_v19  ;;  %vm657_vm11 = vcmask 293888   ;;  %vm923_vm12 = vcmask 1043456   ;;  %vm919_vm13 = vcmask 588800  }
  0x17   : > { %s1159_s26 = smul.u32 12, %s327_s25  ;;  %s1326_s25 = smov 110  }
  0x19   : > { %s330_s29 = scalar_lea.vmem %s1720_s0, %s1159_s26  ;;  %s1327_s26 = smov 111  }
  0x1a   : > { %v333_v15 = vld [vmem:[%s330_s29] sm:$0xff]  ;;  %v334_v16 = vld [vmem:[%s330_s29 + $0x8] sm:$0xf]  ;;  %s1329_s29 = smov 109  }
  0x8e   : > { %v339_v12 = vpop.permute.xlu0 %338 }
  0x8f   : > { %v346_v14 = vrot.slane %v339_v12, %v345_v9 }
  0x91   : > { %v348_v21 = vmul.f32 %v346_v14, %v333_v15  ;;  %v349_v22 = vmul.f32 %v346_v14, %v334_v16 }
  0x92   : > { %v354_v20 = vpop.permute.xlu0 %353 }
  0x93   : > { %v361_v23 = vrot.slane %v354_v20, %v345_v9 }
  0x95   : > { %v363_v24 = vadd.f32 %v361_v23, %v348_v21  ;;  %v364_v25 = vadd.f32 %v361_v23, %v349_v22 }
  0x97   : > { %v365_v28 = vmax.f32 %v363_v24, 0.0  ;;  %v366_v29 = vmax.f32 %v364_v25, 0.0 }
  0x99   : > { %v383_v30 = vmul.f32 %v381_v27, %v365_v28  ;;  %v384_v31 = vmul.f32 %v1452_v26, %v366_v29 }
  0x9b   : > { %559 = vst [vmem:[#allocation2 + $0x30] sm:$0xf] %v383_v30  ;;  %561 = vst [vmem:[#allocation2 + $0x40] sm:$0xf] %v384_v31  ;;  %537 = vrot.lane.b32.xlu0 %v383_v30, %s1321_s17  ;;  %502 = vrot.lane.b32.xlu1 %v383_v30, %s1322_s21  ;;  %v391_v32 = vpack.c.bf16 %v384_v31, %v384_v31  ;;  %v387_v33 = vcombine.high %v383_v30, %v383_v30 }
  0x9c   : > { %v389_v34 = vpack.c.bf16 %v383_v30, %v383_v30 }
  0x9d   : > { %v404_v35 = vsel %vm396_vm0, %v391_v32, 0  ;;  %v390_v36 = vpack.c.bf16 %v387_v33, %v387_v33  ;;  %560 = vst [vmem:[#allocation2 + $0x38] sm:$0xf] %v387_v33 }
  0x9e   : > { %1121 = vmatpush3.bf16.msra.mxu1 %v404_v35  ;;  %v398_v37 = vsel %vm396_vm0, %v389_v34, 0 }
  0x9f   : > { %506 = vrot.lane.b32.xlu0 %v384_v31, %s1322_s21  ;;  %541 = vrot.lane.b32.xlu1 %v384_v31, %s1321_s17 }
  0xa0   : > { %1096 = vmatprep.subr.msk.bf16.mxu0 %vm396_vm0, %v390_v36  ;;  %1126 = vmatprep.subr.bf16.mxu1 %v1319_v3 }
  0xa1   : > { %407 = vmatpush1.bf16.msra.mxu0 %v398_v37  ;;  %1123 = vmatmul.mubr.msk.bf16.vlgmr.msra.gmra.mrb[0].mxu1 %vm392_vm1, %v385_v38 }
  0xa2   : > { %1132 = vmatprep.mubr.msk.bf16.mxu1 %vm1328_vm2, %v1319_v3 }
  0xa3   : > { %487 = vrot.lane.b32.xlu0 %v383_v30, %s1323_s22  ;;  %528 = vrot.lane.b32.xlu1 %v384_v31, %s1324_s23 }
  0xa4   : > { %1097 = vmatmul.mubr.msk.bf16.vlgmr.msra.gmra.mrb[0].mxu0 %vm392_vm1, %v385_v38 }
  0xa5   : > { %702 = vmatprep.mubr.bf16.mxu0 %v1318_v1 }
  0xa7   : > { %524 = vrot.lane.b32.xlu0 %v383_v30, %s1324_s23  ;;  %566 = vrot.lane.b32.xlu1 %v384_v31, %s1325_s24 }
  0xab   : > { %491 = vrot.lane.b32.xlu0 %v384_v31, %s1323_s22  ;;  %601 = vrot.lane.b32.xlu1 %v384_v31, %s1326_s25 }
  0xaf   : > { %562 = vrot.lane.b32.xlu0 %v383_v30, %s1325_s24  ;;  %597 = vrot.lane.b32.xlu1 %v383_v30, %s1326_s25 }
  0xb3   : > { %584 = vrot.lane.b32.xlu0 %v383_v30, %s1327_s26  ;;  %588 = vrot.lane.b32.xlu1 %v384_v31, %s1327_s26 }
  0xb7   : > { %564 = vrot.lane.b32.xlu0 %v387_v33, %s1325_s24  ;;  %504 = vrot.lane.b32.xlu1 %v387_v33, %s1322_s21 }
  0xbb   : > { %599 = vrot.lane.b32.xlu0 %v387_v33, %s1326_s25  ;;  %539 = vrot.lane.b32.xlu1 %v387_v33, %s1321_s17 }
  0xbf   : > { %586 = vrot.lane.b32.xlu0 %v387_v33, %s1327_s26  ;;  %489 = vrot.lane.b32.xlu1 %v387_v33, %s1323_s22 }
  0xc3   : > { %621 = vrot.lane.b32.xlu0 %v387_v33, %s1329_s29  ;;  %526 = vrot.lane.b32.xlu1 %v387_v33, %s1324_s23 }
  0xc7   : > { %754 = vperm.xlu0 %1212, %v751_v39   ;;  %619 = vrot.lane.b32.xlu1 %v383_v30, %s1329_s29 }
  0xcb   : > { %623 = vrot.lane.b32.xlu1 %v384_v31, %s1329_s29 }
  0xcf   : > { %763 = vperm.xlu1 %1213, %v760_v40  }
 0x10d   : > { %v538_v42 = vpop.permute.xlu0 %537  ;;  %v503_v43 = vpop.permute.xlu1 %502 }
 0x111   : > { %v507_v44 = vpop.permute.xlu0 %506  ;;  %v542_v45 = vpop.permute.xlu1 %541 }
 0x112   : > { %v511_v46 = vsel %vm508_vm3, %v507_v44, %v503_v43  ;;  %v546_v47 = vsel %vm543_vm4, %v542_v45, %v538_v42 }
 0x113   : > { %v515_v48 = vrot.slane %v511_v46, 4  ;;  %v550_v49 = vrot.slane %v546_v47, 4 }
 0x115   : > { %521 = vst [vmem:[#allocation2] sm:$0xf0] %v515_v48  ;;  %556 = vst [vmem:[#allocation2 + $0x18] sm:$0xf0] %v550_v49  ;;  %v488_v50 = vpop.permute.xlu0 %487  ;;  %v1508_v51 = vpop.permute.xlu1 %528 }
 0x119   : > { %v1511_v52 = vpop.permute.xlu0 %524  ;;  %v567_v53 = vpop.permute.xlu1 %566 }
 0x11a   : > { %v533_v54 = vsel %vm530_vm5, %v1508_v51, %v1511_v52 }
 0x11b   : > { %534 = vst [vmem:[#allocation2 + $0x18] sm:$0xf] %v533_v54 }
 0x11d   : > { %v492_v55 = vpop.permute.xlu0 %491  ;;  %v602_v56 = vpop.permute.xlu1 %601 }
 0x11e   : > { %v498_v57 = vsel %vm495_vm6, %v492_v55, %v488_v50 }
 0x11f   : > { %499 = vst [vmem:[#allocation2] sm:$0xf] %v498_v57 }
 0x121   : > { %v563_v58 = vpop.permute.xlu0 %562  ;;  %v598_v59 = vpop.permute.xlu1 %597 }
 0x122   : > { %v571_v60 = vsel %vm568_vm7, %v567_v53, %v563_v58  ;;  %v606_v61 = vsel %vm603_vm8, %v602_v56, %v598_v59 }
 0x123   : > { %v577_v62 = vrot.slane %v571_v60, 4  ;;  %v612_v63 = vrot.slane %v606_v61, 4 }
 0x125   : > { %583 = vst [vmem:[#allocation2 + $0x40] sm:$0xf0] %v577_v62  ;;  %618 = vst [vmem:[#allocation2 + $0x58] sm:$0xf0] %v612_v63  ;;  %v585_v0 = vpop.permute.xlu0 %584  ;;  %v589_v2 = vpop.permute.xlu1 %588 }
 0x126   : > { %v593_v4 = vsel %vm590_vm9, %v589_v2, %v585_v0 }
 0x127   : > { %596 = vst [vmem:[#allocation2 + $0x58] sm:$0xf] %v593_v4 }
 0x129   : > { %v565_v5 = vpop.permute.xlu0 %564  ;;  %v505_v6 = vpop.permute.xlu1 %504 }
 0x12a   : > { %v569_v7 = vsel %vm568_vm7, %v565_v5, %v567_v53  ;;  %v570_v8 = vsel %vm568_vm7, %v563_v58, %v565_v5  ;;  %v509_v9 = vsel %vm508_vm3, %v505_v6, %v507_v44  ;;  %v510_v10 = vsel %vm508_vm3, %v503_v43, %v505_v6  ;;  %v633_v44 = vld [vmem:[#allocation2] sm:$0xff] }
 0x12b   : > { %v575_v11 = vrot.slane %v570_v8, 4  ;;  %v576_v12 = vrot.slane %v569_v7, 4  ;;  %v516_v13 = vrot.slane %v510_v10, 4  ;;  %v517_v14 = vrot.slane %v509_v9, 4  ;;  %v632_v8 = vld [vmem:[%s1722_s2] sm:$0xf] }
 0x12c   : > { %v641_v58 = vld [vmem:[#allocation2 + $0x40] sm:$0xff] }
 0x12d   : > { %581 = vst [vmem:[#allocation2 + $0x30] sm:$0xf0] %v575_v11  ;;  %582 = vst [vmem:[#allocation2 + $0x38] sm:$0xf0] %v576_v12  ;;  %v600_v15 = vpop.permute.xlu0 %599  ;;  %v540_v16 = vpop.permute.xlu1 %539 }
 0x12e   : > { %522 = vst [vmem:[#allocation2 + $0x8] sm:$0xf0] %v516_v13  ;;  %523 = vst [vmem:[#allocation2 + $0x10] sm:$0xf0] %v517_v14  ;;  %v604_v17 = vsel %vm603_vm8, %v600_v15, %v602_v56  ;;  %v605_v20 = vsel %vm603_vm8, %v598_v59, %v600_v15  ;;  %v544_v21 = vsel %vm543_vm4, %v540_v16, %v542_v45 }
 0x12f   : > { %v545_v22 = vsel %vm543_vm4, %v538_v42, %v540_v16  ;;  %v610_v23 = vrot.slane %v605_v20, 4  ;;  %v611_v24 = vrot.slane %v604_v17, 4  ;;  %v552_v27 = vrot.slane %v544_v21, 4 }
 0x130   : > { %v551_v25 = vrot.slane %v545_v22, 4 }
 0x131   : > { %616 = vst [vmem:[#allocation2 + $0x48] sm:$0xf0] %v610_v23  ;;  %617 = vst [vmem:[#allocation2 + $0x50] sm:$0xf0] %v611_v24  ;;  %v587_v28 = vpop.permute.xlu0 %586  ;;  %v490_v29 = vpop.permute.xlu1 %489 }
 0x132   : > { %557 = vst [vmem:[#allocation2 + $0x20] sm:$0xf0] %v551_v25  ;;  %558 = vst [vmem:[#allocation2 + $0x28] sm:$0xf0] %v552_v27  ;;  %v591_v30 = vsel %vm590_vm9, %v587_v28, %v589_v2  ;;  %v592_v31 = vsel %vm590_vm9, %v585_v0, %v587_v28  ;;  %v496_v32 = vsel %vm495_vm6, %v490_v29, %v492_v55  ;;  %v644_v55 = vld [vmem:[#allocation2 + $0x58] sm:$0xff] }
 0x133   : > { %v497_v33 = vsel %vm495_vm6, %v488_v50, %v490_v29  ;;  %594 = vst [vmem:[#allocation2 + $0x48] sm:$0xf] %v592_v31  ;;  %595 = vst [vmem:[#allocation2 + $0x50] sm:$0xf] %v591_v30  ;;  %v653_v60 = vpack.c.bf16 %v644_v55, %v641_v58 }
 0x134   : > { %500 = vst [vmem:[#allocation2 + $0x8] sm:$0xf] %v497_v33  ;;  %501 = vst [vmem:[#allocation2 + $0x10] sm:$0xf] %v496_v32  ;;  %v640_v54 = vld [vmem:[#allocation2 + $0x38] sm:$0xff]  ;;  %v639_v61 = vld [vmem:[#allocation2 + $0x30] sm:$0xff] }
 0x135   : > { %v527_v34 = vpop.permute.xlu1 %526  ;;  %v622_v37 = vpop.permute.xlu0 %621 }
 0x136   : > { %v531_v35 = vsel %vm530_vm5, %v527_v34, %v1508_v51  ;;  %v532_v36 = vsel %vm530_vm5, %v1511_v52, %v527_v34  ;;  %v636_v52 = vld [vmem:[#allocation2 + $0x18] sm:$0xff] }
 0x137   : > { %535 = vst [vmem:[#allocation2 + $0x20] sm:$0xf] %v532_v36  ;;  %536 = vst [vmem:[#allocation2 + $0x28] sm:$0xf] %v531_v35  ;;  %v648_v53 = vpack.c.bf16 %v636_v52, %v633_v44 }
 0x139   : > { %v620_v38 = vpop.permute.xlu1 %619 }
 0x13a   : > { %v627_v39 = vsel %vm625_vm10, %v620_v38, %v622_v37  ;;  %v643_v49 = vld [vmem:[#allocation2 + $0x50] sm:$0xff]  ;;  %v642_v57 = vld [vmem:[#allocation2 + $0x48] sm:$0xff] }
 0x13b   : > { %629 = vst [vmem:[#allocation2 + $0x60] sm:$0xf] %v627_v39  ;;  %v634_v42 = vld [vmem:[#allocation2 + $0x8] sm:$0xff]  ;;  %v635_v43 = vld [vmem:[#allocation2 + $0x10] sm:$0xff]  ;;  %v652_v56 = vpack.c.bf16 %v643_v49, %v640_v54  ;;  %v651_v62 = vpack.c.bf16 %v642_v57, %v639_v61 }
 0x13d   : > { %v624_v40 = vpop.permute.xlu1 %623 }
 0x13e   : > { %v626_v45 = vsel %vm625_vm10, %v622_v37, %v624_v40  ;;  %v628_v46 = vsel %vm625_vm10, %v624_v40, %v620_v38  ;;  %v637_v47 = vld [vmem:[#allocation2 + $0x20] sm:$0xff]  ;;  %v638_v48 = vld [vmem:[#allocation2 + $0x28] sm:$0xff] }
 0x13f   : > { %630 = vst [vmem:[#allocation2 + $0x68] sm:$0xf] %v626_v45  ;;  %631 = vst [vmem:[#allocation2 + $0x70] sm:$0xf] %v628_v46  ;;  %v649_v50 = vpack.c.bf16 %v637_v47, %v634_v42  ;;  %v650_v51 = vpack.c.bf16 %v638_v48, %v635_v43 }
 0x141   : > { %670 = vmatprep.subr.bf16.mxu0 %v649_v50  ;;  %1127 = vmatpush3.bf16.msra.mxu1 %v650_v51 }
 0x142   : > { %671 = vmatpush1.bf16.msra.mxu0 %v648_v53  ;;  %1128 = vmatprep.subr.bf16.mxu1 %v1319_v3  ;;  %v645_v59 = vld [vmem:[#allocation2 + $0x60] sm:$0xf] }
 0x143   : > { %672 = vmatprep.subr.bf16.mxu0 %v652_v56  ;;  %v654_v63 = vpack.c.bf16 %v645_v59, %v645_v59 }
 0x145   : > { %1129 = vmatpush3.bf16.msra.mxu1 %v653_v60  ;;  %v662_v6 = vsel %vm396_vm0, %v654_v63, 0 }
 0x146   : > { %673 = vmatpush1.bf16.msra.mxu0 %v651_v62  ;;  %v646_v0 = vld [vmem:[#allocation2 + $0x68] sm:$0xf]  ;;  %1130 = vmatprep.subr.bf16.mxu1 %v1319_v3  ;;  %v647_v2 = vld [vmem:[#allocation2 + $0x70] sm:$0xf]  ;;  %v755_v9 = vpop.permute.xlu0 %754 }
 0x147   : > { %v655_v4 = vpack.c.bf16 %v646_v0, %v646_v0  ;;  %v656_v5 = vpack.c.bf16 %v647_v2, %v647_v2 }
 0x149   : > { %1099 = vmatprep.subr.msk.bf16.mxu0 %vm396_vm0, %v655_v4  ;;  %v668_v7 = vsel %vm396_vm0, %v656_v5, 0 }
 0x14a   : > { %675 = vmatpush1.bf16.msra.mxu0 %v662_v6  ;;  %1131 = vmatpush3.bf16.msra.mxu1 %v668_v7 }
 0x14b   : > { %1136 = vmatprep.subr.bf16.mxu1 %v1319_v3 }
 0x14d   : > { %1100 = vmatmul.mubr.msk.bf16.vlgmr.msra.gmra.mrb[4].mxu0 %vm657_vm11, %v632_v8  ;;  %1133 = vmatmul.mubr.msk.bf16.vlgmr.msra.gmra.mrb[4].mxu1 %vm657_vm11, %v632_v8 }
 0x14e   : > { %965 = vmatprep.mubr.bf16.mxu0 %v1318_v1  ;;  %1146 = vmatprep.mubr.msk.bf16.mxu1 %vm1328_vm2, %v1319_v3  ;;  %v764_v10 = vpop.permute.xlu1 %763 }
 0x220   : > { %v704_v11 = vpop.f32.mrb[4].mxu0  ;;  %v745_v12 = vpop.f32.mrb[4].mxu1 }
 0x221   : > { %v759_v13 = vmul.f32 %v755_v9, %v745_v12  ;;  %v706_v14 = vpop.f32.mrb[5].mxu0  ;;  %v1134_v15 = vpop.f32.mrb[5].mxu1  ;;  %v757_v20 = vmul.f32 %v755_v9, %v704_v11 }
 0x222   : > { %v748_v16 = vpop.f32.mrb[6].mxu1  ;;  %v708_v17 = vpop.f32.mrb[6].mxu0  ;;  %v758_v21 = vmul.f32 %v755_v9, %v706_v14 }
 0x223   : > { %v768_v22 = vadd.f32 %v764_v10, %v759_v13  ;;  %v1135_v23 = vpop.f32.mrb[7].mxu1  ;;  %v709_v24 = vpop.f32.mrb[7].mxu0  ;;  %v766_v27 = vadd.f32 %v764_v10, %v757_v20 }
 0x224   : > { %v767_v1 = vadd.f32 %v764_v10, %v758_v21 }
 0x225   : > { %v771_v25 = vmax.f32 %v768_v22, 0.0  ;;  %v769_v29 = vmax.f32 %v766_v27, 0.0 }
 0x226   : > { %v770_v30 = vmax.f32 %v767_v1, 0.0 }
 0x227   : > { %v1579_v28 = vmul.f32 %v771_v25, %v1452_v26  ;;  %v1590_v31 = vmul.f32 %v769_v29, %v1448_v18 }
 0x228   : > { %v1593_v26 = vmul.f32 %v770_v30, %v1450_v19 }
 0x229   : > { %793 = vrot.lane.b32.xlu1 %v1579_v28, %s1322_s21  ;;  %781 = vrot.lane.b32.xlu0 %v1579_v28, %s1323_s22 }
 0x22a   : > { %v1219_v32 = vpack.i.bf16 %v1593_v26, %v1590_v31  ;;  %v1234_v18 = vpack.i.bf16 %v1579_v28, %v1593_v26 }
 0x22d   : > { %817 = vrot.lane.b32.xlu1 %v1579_v28, %s1321_s17  ;;  %805 = vrot.lane.b32.xlu0 %v1579_v28, %s1324_s23 }
 0x231   : > { %840 = vrot.lane.b32.xlu0 %v1590_v31, %s1327_s26  ;;  %828 = vrot.lane.b32.xlu1 %v1590_v31, %s1325_s24 }
 0x235   : > { %1220 = vrot.lane.b32.xlu1 %v1219_v32, %s1322_s21  ;;  %1215 = vrot.lane.b32.xlu0 %v1219_v32, %s1323_s22  ;;  %s323_s22 = sand.u32 1, %s1308_s10  }
 0x239   : > { %1230 = vrot.lane.b32.xlu1 %v1219_v32, %s1321_s17  ;;  %1225 = vrot.lane.b32.xlu0 %v1219_v32, %s1324_s23  ;;  %s1158_s23 = smul.u32 24, %s323_s22  ;;  %s1258_s17 = sshll.u32 %s1330_s16, 4  ;;  %s1259_s17 = int_to_ptr.vmem [resolvable:$false] %s1258_s17 }
 0x23a   : > { %s1260_s21 = scalar_lea.vmem %s1259_s17, 768 }
 0x23d   : > { %852 = vrot.lane.b32.xlu1 %v1590_v31, %s1326_s25  ;;  %1235 = vrot.lane.b32.xlu0 %v1234_v18, %s1325_s24  ;;  %s1160_s24 = smul.u32 384, %s1402_s13  ;;  %s1018_s13 = scalar_lea.sflag [#allocation5], %s323_s22 }
 0x23f   : > { %s1678_s28 = scalar_lea.hbm %s1729_s9, %s1160_s24 }
 0x241   : > { %1245 = vrot.lane.b32.xlu1 %v1234_v18, %s1326_s25  ;;  %1240 = vrot.lane.b32.xlu0 %v1234_v18, %s1327_s26  ;;  %s325_s25 = scalar_lea.vmem [#allocation4], %s1158_s23 }
 0x242   : > { %s1032_s26 = sshll.u32 %s325_s25, 4  ;;  %s1680_s26 = int_to_ptr.vmem [resolvable:$true] %s1032_s26 }
 0x243   : > { %s1254_s14 = scalar_lea.vmem %s1680_s26, 384  ;;  %p1261_p0 = scmp.lt.s32.totalorder %s1680_s26, %s1259_s17 }
 0x244   : > { %p1255_p11 = scmp.ne.s32.totalorder %s1680_s26, %s1254_s14  ;;  %p1262_p1 = scmp.lt.s32.totalorder %s1260_s21, %s1254_s14 }
 0x245   : > { %868 = vrot.lane.b32.xlu1 %v1579_v28, %s1329_s29  ;;  %1250 = vrot.lane.b32.xlu0 %v1219_v32, %s1329_s29 }
 0x246   : > { %p1256_p12 = pnand %p1255_p11, %p1419_p5  ;;  %p1263_p2 = por %p1262_p1, %p1261_p0 }
 0x248   : > { %p1257_p13 = pneg %p1256_p12 }
 0x24a   : > { %p1264_p3 = pnand %p1263_p2, %p1257_p13 }
 0x29b   : > { %v794_v19 = vpop.permute.xlu1 %793  ;;  %v782_v33 = vpop.permute.xlu0 %781 }
 0x29f   : > { %v818_v34 = vpop.permute.xlu1 %817  ;;  %v806_v35 = vpop.permute.xlu0 %805 }
 0x2a3   : > { %v841_v36 = vpop.permute.xlu0 %840  ;;  %v829_v37 = vpop.permute.xlu1 %828 }
 0x2a7   : > { %v1221_v38 = vpop.permute.xlu1 %1220  ;;  %v1216_v39 = vpop.permute.xlu0 %1215 }
 0x2a8   : > { %v1223_v40 = vunpack.i.h.bf16 %v1221_v38  ;;  %v1222_v42 = vunpack.i.l.bf16 %v1221_v38  ;;  %v1218_v43 = vunpack.i.h.bf16 %v1216_v39  ;;  %v1217_v44 = vunpack.i.l.bf16 %v1216_v39 }
 0x2aa   : > { %v795_v45 = vsel %vm508_vm3, %v1223_v40, %v794_v19  ;;  %v797_v46 = vsel %vm508_vm3, %v794_v19, %v1222_v42  ;;  %v783_v47 = vsel %vm495_vm6, %v1218_v43, %v782_v33  ;;  %v785_v48 = vsel %vm495_vm6, %v782_v33, %v1217_v44 }
 0x2ab   : > { %v906_v49 = vpack.c.bf16 %v795_v45, %v783_v47  ;;  %v904_v50 = vpack.c.bf16 %v797_v46, %v785_v48  ;;  %v1231_v51 = vpop.permute.xlu1 %1230  ;;  %v1226_v52 = vpop.permute.xlu0 %1225  ;;  %v784_v53 = vsel %vm495_vm6, %v1217_v44, %v1218_v43  ;;  %v796_v54 = vsel %vm508_vm3, %v1222_v42, %v1223_v40  ;;  %v876_v44 = vld [vmem:[%s1723_s3] sm:$0xf] }
 0x2ac   : > { %v1233_v55 = vunpack.i.h.bf16 %v1231_v51  ;;  %v1232_v56 = vunpack.i.l.bf16 %v1231_v51  ;;  %v1228_v57 = vunpack.i.h.bf16 %v1226_v52  ;;  %v1227_v58 = vunpack.i.l.bf16 %v1226_v52 }
 0x2ad   : > { %v905_v59 = vpack.c.bf16 %v796_v54, %v784_v53  ;;  %1137 = vmatpush3.bf16.msra.mxu1 %v906_v49 }
 0x2ae   : > { %v819_v60 = vsel %vm543_vm4, %v1233_v55, %v818_v34  ;;  %v821_v61 = vsel %vm543_vm4, %v818_v34, %v1232_v56  ;;  %v807_v62 = vsel %vm530_vm5, %v1228_v57, %v806_v35  ;;  %v809_v63 = vsel %vm530_vm5, %v806_v35, %v1227_v58  ;;  %1138 = vmatprep.subr.bf16.mxu1 %v1319_v3 }
 0x2af   : > { %v909_v0 = vpack.c.bf16 %v819_v60, %v807_v62  ;;  %933 = vmatprep.subr.bf16.mxu0 %v905_v59  ;;  %v853_v2 = vpop.permute.xlu1 %852  ;;  %v1236_v4 = vpop.permute.xlu0 %1235  ;;  %v808_v5 = vsel %vm530_vm5, %v1227_v58, %v1228_v57  ;;  %v820_v6 = vsel %vm543_vm4, %v1232_v56, %v1233_v55  ;;  %v907_v7 = vpack.c.bf16 %v821_v61, %v809_v63 }
 0x2b0   : > { %934 = vmatpush1.bf16.msra.mxu0 %v904_v50  ;;  %v1238_v8 = vunpack.i.h.bf16 %v1236_v4  ;;  %v1237_v9 = vunpack.i.l.bf16 %v1236_v4  ;;  %v908_v10 = vpack.c.bf16 %v820_v6, %v808_v5 }
 0x2b1   : > { %1139 = vmatpush3.bf16.msra.mxu1 %v909_v0 }
 0x2b2   : > { %v836_v11 = vsel %vm568_vm7, %v1238_v8, %v829_v37  ;;  %v835_v12 = vsel %vm568_vm7, %v829_v37, %v1237_v9  ;;  %935 = vmatprep.subr.bf16.mxu0 %v908_v10  ;;  %1140 = vmatprep.subr.bf16.mxu1 %v1319_v3  ;;  %v834_v13 = vsel %vm568_vm7, %v1237_v9, %v1238_v8 }
 0x2b3   : > { %v912_v14 = vpack.c.bf16 %v836_v11, %v1579_v28  ;;  %v910_v15 = vpack.c.bf16 %v835_v12, %v1590_v31  ;;  %v1246_v16 = vpop.permute.xlu1 %1245  ;;  %v1241_v17 = vpop.permute.xlu0 %1240  ;;  %v911_v20 = vpack.c.bf16 %v834_v13, %v1593_v26 }
 0x2b4   : > { %936 = vmatpush1.bf16.msra.mxu0 %v907_v7  ;;  %v1248_v21 = vunpack.i.h.bf16 %v1246_v16  ;;  %v1247_v22 = vunpack.i.l.bf16 %v1246_v16  ;;  %v1243_v23 = vunpack.i.h.bf16 %v1241_v17  ;;  %v1242_v24 = vunpack.i.l.bf16 %v1241_v17 }
 0x2b5   : > { %937 = vmatprep.subr.bf16.mxu0 %v911_v20  ;;  %1141 = vmatpush3.bf16.msra.mxu1 %v912_v14 }
 0x2b6   : > { %v860_v25 = vsel %vm603_vm8, %v1248_v21, %v853_v2  ;;  %v859_v27 = vsel %vm603_vm8, %v853_v2, %v1247_v22  ;;  %v848_v1 = vsel %vm590_vm9, %v1243_v23, %v841_v36  ;;  %v847_v28 = vsel %vm590_vm9, %v841_v36, %v1242_v24  ;;  %1142 = vmatprep.subr.bf16.mxu1 %v1319_v3 }
 0x2b7   : > { %v915_v29 = vpack.c.bf16 %v860_v25, %v848_v1  ;;  %v1251_v30 = vpop.permute.xlu0 %1250  ;;  %v846_v31 = vsel %vm590_vm9, %v1242_v24, %v1243_v23  ;;  %v858_v26 = vsel %vm603_vm8, %v1247_v22, %v1248_v21  ;;  %v913_v32 = vpack.c.bf16 %v859_v27, %v847_v28  ;;  %v869_v34 = vpop.permute.xlu1 %868 }
 0x2b8   : > { %938 = vmatpush1.bf16.msra.mxu0 %v910_v15  ;;  %v1253_v18 = vunpack.i.h.bf16 %v1251_v30  ;;  %v1252_v19 = vunpack.i.l.bf16 %v1251_v30  ;;  %v914_v33 = vpack.c.bf16 %v858_v26, %v846_v31 }
 0x2b9   : > { %1143 = vmatpush3.bf16.msra.mxu1 %v915_v29 }
 0x2ba   : > { %v870_v35 = vsel %vm625_vm10, %v1253_v18, %v869_v34  ;;  %v871_v36 = vsel %vm625_vm10, %v1252_v19, %v1253_v18  ;;  %v872_v37 = vsel %vm625_vm10, %v869_v34, %v1252_v19  ;;  %939 = vmatprep.subr.bf16.mxu0 %v914_v33  ;;  %1144 = vmatprep.subr.bf16.mxu1 %v1319_v3 }
 0x2bb   : > { %v917_v38 = vpack.c.bf16 %v870_v35, %v870_v35  ;;  %v916_v39 = vpack.c.bf16 %v871_v36, %v871_v36  ;;  %v918_v40 = vpack.c.bf16 %v872_v37, %v872_v37 }
 0x2bc   : > { %940 = vmatpush1.bf16.msra.mxu0 %v913_v32 }
 0x2bd   : > { %1102 = vmatprep.subr.msk.bf16.mxu0 %vm923_vm12, %v917_v38  ;;  %v925_v42 = vsel %vm923_vm12, %v916_v39, 0  ;;  %v931_v43 = vsel %vm923_vm12, %v918_v40, 0 }
 0x2be   : > { %1145 = vmatpush3.bf16.msra.mxu1 %v931_v43 }
 0x2c0   : > { %942 = vmatpush1.bf16.msra.mxu0 %v925_v42 }
 0x2c1   : > { %1147 = vmatmul.mubr.msk.bf16.vlgmr.msra.gmra.mrb[0].mxu1 %vm919_vm13, %v876_v44 }
 0x2c3   : > { %1103 = vmatmul.mubr.msk.bf16.vlgmr.msra.gmra.mrb[0].mxu0 %vm919_vm13, %v876_v44 }
 0x394   : > { %v1008_v3 = vpop.f32.mrb[0].mxu1 }
 0x395   : > { %1016 = vst [vmem:[%s325_s25 + $0x10] sm:$0xff] %v1008_v3  ;;  %v1148_v41 = vpop.f32.mrb[1].mxu1 }
 0x396   : > { %v967_v45 = vpop.f32.mrb[0].mxu0  ;;  %v1011_v46 = vpop.f32.mrb[2].mxu1 }
 0x397   : > { %1014 = vst [vmem:[%s325_s25] sm:$0xff] %v967_v45  ;;  %v969_v47 = vpop.f32.mrb[1].mxu0  ;;  %v1149_v48 = vpop.f32.mrb[3].mxu1 }
 0x398   : > { %1015 = vst [vmem:[%s325_s25 + $0x8] sm:$0xff] %v969_v47  ;;  %v971_v49 = vpop.f32.mrb[2].mxu0 }
 0x399   : > { %v972_v50 = vpop.f32.mrb[3].mxu0 }
 0x39a   : > { %1267 = shalt.err (!%p1264_p3)
}
 0x39b   : > { %s1268_s22 = scalar_lea.hbm %s1678_s28, 384  ;;  %s1272_s25 = scalar_lea.hbm %s1729_s9, 768 }
 0x39c   : > { %p1269_p4 = scmp.ne.s32.totalorder %s1678_s28, %s1268_s22  ;;  %p1273_p9 = scmp.lt.u32.totalorder %s1678_s28, %s1729_s9 }
 0x39d   : > { %p1274_p10 = scmp.lt.u32.totalorder %s1272_s25, %s1268_s22  ;;  %p1276_p12 = scmp.lt.u32.totalorder %s1268_s22, %s1678_s28 }
 0x39e   : > { %p1270_p7 = pnand %p1269_p4, %p1419_p5 }
 0x39f   : > { %p1275_p11 = por %p1274_p10, %p1273_p9 }
 0x3a0   : > { %p1271_p8 = pneg %p1270_p7 }
 0x3a1   : > { %p1277_p13 = por %p1276_p12, %p1275_p11 }
 0x3a3   : > { %p1278_p0 = pnand %p1277_p13, %p1271_p8 }
 0x3a5   : > { %1281 = shalt.err (!%p1278_p0)
}
 0x3a6   : > { %1161 = dma.vmem_to_hbm [thread:$0]  (%p1419_p5), %s1680_s26, 384, %s1678_s28, %s1018_s13  }
 0x3a7 PF: > { %p1167_p1 = scmp.ge.s32.totalorder %s1316_s12, 2  ;;  %s1044_s14 = sand.u32 1, %s1304_s30  }
 0x3a8   : > { %s1045_s16 = scalar_lea.sflag [#allocation5], %s1044_s14 }
 0x3a9   : > { %p1164_p2 = pnand %p1167_p1, %p1423_p6 }
 0x3ab   : > { %1299 = dma.done.wait (!%p1164_p2), %s1045_s16, 384  }
 0x3ac   : > { %1301 = vsyncadd (!%p1164_p2), %s1045_s16, 4294966912  ;;  %p19_p3 = scmp.ge.s32.totalorder %s1406_s15, 4   ;;  %s1732_s30 = smov %s1308_s10 }
 0x3ad   : > { %s1733_s10 = smov %s1312_s11  ;;  %s1734_s11 = smov %s1417_s18 }
 0x3ae   : > { %s1735_s12 = smov %s1406_s15  ;;  %21 = sbr.rel (!%p19_p3) target bundleno = 3 (0x3), region = 91 }
 0x3b5   :  { %1050 = vsyncpa [#allocation5], 1 }
 0x3b6   :  { %1052 = vsyncpa [#allocation5 + $0x1], 1 }

</bundles_post_ra>
